<compile_context>
chip_gen: v7x
topology: tpu7x:2x2x1
jax: 0.10.0
libtpu: 0.0.40
codegen_flags: <defaults>
</compile_context>

<pallas_src>
import jax
import jax.numpy as jnp
from jax.experimental import pallas as pl
from jax.experimental.pallas import tpu as pltpu

EPS = 1e-6


# ----------------------------- helpers ---------------------------------------
def _round_up(x, m):
    return ((x + m - 1) // m) * m


def _row_multiple(dtype):
    return 16 if jnp.dtype(dtype) == jnp.bfloat16 else 8


def _vmem_capacity_bytes():
    try:
        cap = int(getattr(pltpu.get_tpu_info(), "vmem_capacity_bytes", 0))
        if cap > 0:
            return cap
    except Exception:
        pass
    return 64 << 20  # conservative fallback (v7x per-core VMEM)


def _row_target(cap):
    # mem-bound kernels hit ~85% of HBM roofline at 512 rows, ~86% at 1024:
    # use the bigger tile only where VMEM is plentiful (v5e/v6e: 128 MiB).
    return 1024 if cap >= (100 << 20) else 512


def _pick_block_rows(n_rows, per_row_bytes, fixed_bytes, dtype, budget, target):
    """Largest row tile <= target that fits the VMEM budget, rounded to an
    MXU/sublane-friendly multiple; tiny inputs use the rounded full extent."""
    mult = _row_multiple(dtype)
    avail = max(budget - fixed_bytes, per_row_bytes * mult)
    cap_rows = max(avail // per_row_bytes, mult)
    br = min(int(target), int(cap_rows), _round_up(n_rows, mult))
    if br >= 256:
        br = (br // 256) * 256
    else:
        br = max((br // mult) * mult, mult)
    return int(br)


def _pick_matmul_tile(d, pref=256):
    """N/K tile width: 256 matches the 2x256x256 MXU (v6e/v7x); fall back to
    128 (v5e MXU width), or a full-extent block for small / irregular D."""
    if d <= pref:
        return d
    for t in (pref, 128):
        if d % t == 0:
            return t
    return d


def _compiler_params(dims, cap):
    # generation-aware VMEM cap: ~85% of physical leaves headroom for Mosaic
    # internal scratch (v7x: ~54 of 64 MiB; v5e/v6e: ~108 of 128 MiB).
    return pltpu.CompilerParams(
        dimension_semantics=dims,
        vmem_limit_bytes=int(cap * 0.85),
    )


def _pad_rows(x2d, r_pad):
    r = x2d.shape[0]
    if r_pad == r:
        return x2d
    return jnp.pad(x2d, ((0, r_pad - r), (0, 0)))


def _layernorm_math(x_f32, a_f32, b_f32):
    """torch semantics: mean over last dim, *unbiased* std (Bessel)."""
    d = x_f32.shape[-1]
    mean = jnp.mean(x_f32, axis=-1, keepdims=True)
    xc = x_f32 - mean
    var_unbiased = jnp.sum(xc * xc, axis=-1, keepdims=True) / (d - 1)
    std = jnp.sqrt(var_unbiased)
    return a_f32 * (xc / (std + EPS)) + b_f32


# ----------------------------- kernels ----------------------------------------
def _fused_kernel(rw_ref, x_ref, w_ref, a_ref, b_ref, o_ref, xn_ref, acc_ref):
    """One (row-block i, n-tile, k-tile) grid step of
        out = x + rw * (LayerNorm(x) @ W).
    LN(x) is computed once per row block at (n==0, k==0) and cached in xn_ref;
    the matmul accumulates into acc_ref across k; the residual add is the
    epilogue at the last k, re-reading x from its VMEM tile."""
    n = pl.program_id(1)
    k = pl.program_id(2)
    tn = o_ref.shape[-1]
    tk = w_ref.shape[0]

    @pl.when(jnp.logical_and(n == 0, k == 0))
    def _():
        x = x_ref[...].astype(jnp.float32)
        xn = _layernorm_math(x, a_ref[...].astype(jnp.float32),
                             b_ref[...].astype(jnp.float32))
        xn_ref[...] = xn.astype(xn_ref.dtype)

    @pl.when(k == 0)
    def _():
        acc_ref[...] = jnp.zeros_like(acc_ref)

    k_off = pl.multiple_of(k * tk, tk)
    acc_ref[...] += jnp.dot(xn_ref[:, pl.ds(k_off, tk)], w_ref[...],
                            preferred_element_type=jnp.float32)

    @pl.when(k == pl.num_programs(2) - 1)
    def _():
        n_off = pl.multiple_of(n * tn, tn)
        x_res = x_ref[:, pl.ds(n_off, tn)].astype(jnp.float32)
        o_ref[...] = (x_res + rw_ref[0] * acc_ref[...]).astype(o_ref.dtype)


def _layernorm_kernel(x_ref, a_ref, b_ref, o_ref):
    x = x_ref[...].astype(jnp.float32)
    y = _layernorm_math(x, a_ref[...].astype(jnp.float32),
                        b_ref[...].astype(jnp.float32))
    o_ref[...] = y.astype(o_ref.dtype)


def _residual_kernel(rw_ref, x_ref, y_ref, o_ref):
    """out = x + rw * y (dropout == identity in eval mode), computed in f32."""
    out = x_ref[...].astype(jnp.float32) + rw_ref[0] * y_ref[...].astype(jnp.float32)
    o_ref[...] = out.astype(o_ref.dtype)


# ----------------------------- wrappers ----------------------------------------
def sublayer_connection_linear(x, w, a_2, b_2, resweight, *,
                               mxu_dtype=jnp.bfloat16, block_rows=None):
    """Fused LN -> (LN(x) @ W) -> residual for a linear sublayer.

    x: [B, S, D], w: [D, D].  mxu_dtype controls the matmul input precision
    (bf16 default for MXU rate / bandwidth; pass jnp.float32 for exactness)."""
    B, S, D = x.shape
    assert D > 1, "unbiased std needs D > 1"
    assert w.shape == (D, D)
    R = B * S

    cap = _vmem_capacity_bytes()
    budget = int(cap * 0.75)
    tn = _pick_matmul_tile(D)
    tk = _pick_matmul_tile(D)

    w_c = w.astype(mxu_dtype)
    xb = jnp.dtype(x.dtype).itemsize
    mb = jnp.dtype(mxu_dtype).itemsize
    pb = jnp.dtype(a_2.dtype).itemsize

    # VMEM accounting (per row of the row block / fixed):
    per_row = (2 * D * xb            # x tile, double-buffered
               + 2 * tn * xb         # out tile, double-buffered
               + D * mb              # cached LN(x) scratch
               + tn * 4)             # f32 accumulator scratch
    fixed = 2 * tk * tn * mb + 2 * D * pb   # W tile (2 bufs) + a_2/b_2 (1 buf)

    if block_rows is None:
        block_rows = _pick_block_rows(R, per_row, fixed, x.dtype, budget,
                                      _row_target(cap))
    R_pad = _round_up(R, block_rows)
    x2d = _pad_rows(x.reshape(R, D), R_pad)
    rw = jnp.asarray(resweight, jnp.float32).reshape((1,))

    grid = (R_pad // block_rows, D // tn, D // tk)

    out = pl.pallas_call(
        _fused_kernel,
        out_shape=jax.ShapeDtypeStruct((R_pad, D), x.dtype),
        grid_spec=pltpu.PrefetchScalarGridSpec(
            num_scalar_prefetch=1,                                   # resweight
            grid=grid,
            in_specs=[
                # x: full row block; index depends only on i -> no re-DMA per n/k
                pl.BlockSpec((block_rows, D), lambda i, n, k, rw: (i, 0)),
                # W: (tk, tn) tile
                pl.BlockSpec((tk, tn), lambda i, n, k, rw: (k, n)),
                # grid-invariant LN params: single-buffered
                pl.BlockSpec((1, D), lambda i, n, k, rw: (0, 0),
                             pipeline_mode=pl.Buffered(1)),
                pl.BlockSpec((1, D), lambda i, n, k, rw: (0, 0),
                             pipeline_mode=pl.Buffered(1)),
            ],
            out_specs=pl.BlockSpec((block_rows, tn), lambda i, n, k, rw: (i, n)),
            scratch_shapes=[
                pltpu.VMEM((block_rows, D), mxu_dtype),      # cached LN(x)
                pltpu.VMEM((block_rows, tn), jnp.float32),   # matmul accumulator
            ],
        ),
        # rows are independent (megacore-parallel); n/k stay "arbitrary" so the
        # xn cache written at (n==0, k==0) is valid for the whole row block.
        compiler_params=_compiler_params(("parallel", "arbitrary", "arbitrary"),
                                         cap),
    )(rw, x2d, w_c, a_2.reshape(1, D), b_2.reshape(1, D))
    return out[:R].reshape(B, S, D)


def pallas_layernorm(x2d, a_2, b_2, *, out_dtype=None, block_rows=None):
    R, D = x2d.shape
    out_dtype = out_dtype or x2d.dtype        # bf16 here halves HBM traffic
    cap = _vmem_capacity_bytes()
    per_row = (2 * D * jnp.dtype(x2d.dtype).itemsize
               + 2 * D * jnp.dtype(out_dtype).itemsize)
    fixed = 2 * D * jnp.dtype(a_2.dtype).itemsize
    if block_rows is None:
        block_rows = _pick_block_rows(R, per_row, fixed, x2d.dtype,
                                      int(cap * 0.75), _row_target(cap))
    R_pad = _round_up(R, block_rows)
    xp = _pad_rows(x2d, R_pad)
    out = pl.pallas_call(
        _layernorm_kernel,
        out_shape=jax.ShapeDtypeStruct((R_pad, D), out_dtype),
        grid=(R_pad // block_rows,),
        in_specs=[
            pl.BlockSpec((block_rows, D), lambda i: (i, 0)),
            pl.BlockSpec((1, D), lambda i: (0, 0), pipeline_mode=pl.Buffered(1)),
            pl.BlockSpec((1, D), lambda i: (0, 0), pipeline_mode=pl.Buffered(1)),
        ],
        out_specs=pl.BlockSpec((block_rows, D), lambda i: (i, 0)),
        compiler_params=_compiler_params(("parallel",), cap),
    )(xp, a_2.reshape(1, D), b_2.reshape(1, D))
    return out[:R]


def pallas_residual(x2d, y2d, resweight, *, block_rows=None):
    R, D = x2d.shape
    cap = _vmem_capacity_bytes()
    per_row = 6 * D * jnp.dtype(x2d.dtype).itemsize   # x, y, out double-buffered
    if block_rows is None:
        block_rows = _pick_block_rows(R, per_row, 0, x2d.dtype,
                                      int(cap * 0.75), _row_target(cap))
    R_pad = _round_up(R, block_rows)
    xp = _pad_rows(x2d, R_pad)
    yp = _pad_rows(y2d, R_pad)
    rw = jnp.asarray(resweight, jnp.float32).reshape((1,))
    out = pl.pallas_call(
        _residual_kernel,
        out_shape=jax.ShapeDtypeStruct((R_pad, D), x2d.dtype),
        grid_spec=pltpu.PrefetchScalarGridSpec(
            num_scalar_prefetch=1,                                   # resweight
            grid=(R_pad // block_rows,),
            in_specs=[
                pl.BlockSpec((block_rows, D), lambda i, rw: (i, 0)),
                pl.BlockSpec((block_rows, D), lambda i, rw: (i, 0)),
            ],
            out_specs=pl.BlockSpec((block_rows, D), lambda i, rw: (i, 0)),
        ),
        compiler_params=_compiler_params(("parallel",), cap),
    )(rw, xp, yp)
    return out[:R]


def sublayer_connection(x, sublayer, a_2, b_2, resweight, *, block_rows=None):
    """Generic path: x: [B, S, D]; sublayer: callable [B,S,D] -> [B,S,D]."""
    B, S, D = x.shape
    assert D > 1, "unbiased std needs D > 1"
    R = B * S
    x2d = x.reshape(R, D)
    xn = pallas_layernorm(x2d, a_2, b_2, block_rows=block_rows)
    # TODO(synk): training-mode dropout (pltpu.prng_seed + stateful_bernoulli)
    # would be applied to y here; eval-mode dropout is identity.
    y = sublayer(xn.reshape(B, S, D)).reshape(R, D)
    out = pallas_residual(x2d, y, resweight, block_rows=block_rows)
    return out.reshape(B, S, D)


# ----------------------------- reference --------------------------------------
def _ref_forward(x, sublayer, a_2, b_2, resweight):
    mean = jnp.mean(x, axis=-1, keepdims=True)
    std = jnp.sqrt(jnp.sum((x - mean) ** 2, axis=-1, keepdims=True)
                   / (x.shape[-1] - 1))
    xn = a_2 * (x - mean) / (std + EPS) + b_2
    return x + resweight * sublayer(xn)


# ----------------------------- main --------------------------------------------
if __name__ == "__main__":
    B, S, D = 2, 8, 128   # batch=2, seq=8, hidden=128 (lane-friendly feature dim)

    key = jax.random.PRNGKey(0)
    kx, kw, ka, kb = jax.random.split(key, 4)
    x = jax.random.normal(kx, (B, S, D), dtype=jnp.float32)

    # LayerNorm parameters perturbed from the module's ones/zeros init so the
    # affine path is exercised.
    a_2 = 1.0 + 0.1 * jax.random.normal(ka, (D,), dtype=jnp.float32)
    b_2 = 0.1 * jax.random.normal(kb, (D,), dtype=jnp.float32)
    # Module init sets resweight = 0 (ReZero); nonzero so the residual branch
    # is exercised.
    resweight = jnp.float32(0.5)

    # Deterministic linear sublayer.
    W = jax.random.normal(kw, (D, D), dtype=jnp.float32) / jnp.sqrt(D)
    sublayer = lambda h: jnp.einsum("bsd,de->bse", h, W)

    ref = jax.block_until_ready(_ref_forward(x, sublayer, a_2, b_2, resweight))

    out_fused_bf16 = jax.block_until_ready(
        sublayer_connection_linear(x, W, a_2, b_2, resweight))            # bf16 MXU
    out_fused_f32 = jax.block_until_ready(
        sublayer_connection_linear(x, W, a_2, b_2, resweight,
                                   mxu_dtype=jnp.float32))                # f32 MXU
    out_generic = jax.block_until_ready(
        sublayer_connection(x, sublayer, a_2, b_2, resweight))

    assert out_fused_bf16.shape == (B, S, D)
    assert out_fused_f32.shape == (B, S, D)
    assert out_generic.shape == (B, S, D)
    assert jnp.allclose(out_fused_bf16, ref, atol=3e-2, rtol=3e-2), \
        "fused bf16 mismatch"
    assert jnp.allclose(out_fused_f32, ref, atol=5e-3, rtol=5e-3), \
        "fused f32 mismatch"
    assert jnp.allclose(out_generic, ref, atol=2e-3, rtol=2e-3), \
        "generic mismatch"

    print("KERNEL_OK")
</pallas_src>

<mosaic_0001>
module attributes {stable_mosaic.version = 11 : i64} {
  func.func @_fused_kernel(%arg0: i32, %arg1: i32, %arg2: i32, %arg3: memref<1xf32, #tpu.memory_space<smem>>, %arg4: memref<16x128xf32, #tpu.memory_space<vmem>>, %arg5: memref<128x128xbf16, #tpu.memory_space<vmem>>, %arg6: memref<1x128xf32, #tpu.memory_space<vmem>>, %arg7: memref<1x128xf32, #tpu.memory_space<vmem>>, %arg8: memref<16x128xf32, #tpu.memory_space<vmem>>, %arg9: memref<16x128xbf16, #tpu.memory_space<vmem>>, %arg10: memref<16x128xf32, #tpu.memory_space<vmem>>) attributes {dimension_semantics = [#tpu.dimension_semantics<parallel>, #tpu.dimension_semantics<arbitrary>, #tpu.dimension_semantics<arbitrary>], iteration_bounds = array<i64: 1, 1, 1>, scalar_prefetch = 1 : i64, scratch_operands = 2 : i64, tpu.core_type = #tpu.core_type<tc>, window_params = [{transform_indices = @transform_0, window_bounds = array<i64: 16, 128>}, {transform_indices = @transform_1, window_bounds = array<i64: 128, 128>}, {pipeline_mode = #tpu.pipeline_mode<synchronous>, transform_indices = @transform_2, window_bounds = array<i64: 1, 128>}, {pipeline_mode = #tpu.pipeline_mode<synchronous>, transform_indices = @transform_3, window_bounds = array<i64: 1, 128>}, {transform_indices = @transform_4, window_bounds = array<i64: 16, 128>}]} {
    %c0_i32 = arith.constant 0 : i32
    %0 = arith.cmpi eq, %arg1, %c0_i32 : i32
    %c0_i32_0 = arith.constant 0 : i32
    %1 = arith.cmpi eq, %arg2, %c0_i32_0 : i32
    %2 = arith.andi %0, %1 : i1
    %3 = arith.extui %2 : i1 to i32
    %c0_i32_1 = arith.constant 0 : i32
    %4 = arith.cmpi ne, %3, %c0_i32_1 : i32
    scf.if %4 {
      %c0_12 = arith.constant 0 : index
      %c0_13 = arith.constant 0 : index
      %20 = vector.load %arg4[%c0_12, %c0_13] : memref<16x128xf32, #tpu.memory_space<vmem>>, vector<16x128xf32>
      %c0_14 = arith.constant 0 : index
      %c0_15 = arith.constant 0 : index
      %21 = vector.load %arg6[%c0_14, %c0_15] : memref<1x128xf32, #tpu.memory_space<vmem>>, vector<1x128xf32>
      %c0_16 = arith.constant 0 : index
      %c0_17 = arith.constant 0 : index
      %22 = vector.load %arg7[%c0_16, %c0_17] : memref<1x128xf32, #tpu.memory_space<vmem>>, vector<1x128xf32>
      %cst_18 = arith.constant dense<0.000000e+00> : vector<16xf32>
      %23 = vector.multi_reduction <add>, %20, %cst_18 [1] : vector<16x128xf32> to vector<16xf32>
      %24 = vector.shape_cast %23 : vector<16xf32> to vector<16x1xf32>
      %cst_19 = arith.constant 1.280000e+02 : f32
      %25 = vector.broadcast %cst_19 : f32 to vector<16x1xf32>
      %26 = arith.divf %24, %25 : vector<16x1xf32>
      %27 = vector.broadcast %26 : vector<16x1xf32> to vector<16x128xf32>
      %28 = arith.subf %20, %27 : vector<16x128xf32>
      %29 = arith.mulf %28, %28 : vector<16x128xf32>
      %cst_20 = arith.constant dense<0.000000e+00> : vector<16xf32>
      %30 = vector.multi_reduction <add>, %29, %cst_20 [1] : vector<16x128xf32> to vector<16xf32>
      %31 = vector.shape_cast %30 : vector<16xf32> to vector<16x1xf32>
      %cst_21 = arith.constant 1.270000e+02 : f32
      %32 = vector.broadcast %cst_21 : f32 to vector<16x1xf32>
      %33 = arith.divf %31, %32 : vector<16x1xf32>
      %34 = math.sqrt %33 : vector<16x1xf32>
      %cst_22 = arith.constant 9.99999997E-7 : f32
      %35 = vector.broadcast %cst_22 : f32 to vector<16x1xf32>
      %36 = arith.addf %34, %35 : vector<16x1xf32>
      %37 = vector.broadcast %36 : vector<16x1xf32> to vector<16x128xf32>
      %38 = arith.divf %28, %37 : vector<16x128xf32>
      %39 = vector.broadcast %21 : vector<1x128xf32> to vector<16x128xf32>
      %40 = arith.mulf %39, %38 : vector<16x128xf32>
      %41 = vector.broadcast %22 : vector<1x128xf32> to vector<16x128xf32>
      %42 = arith.addf %40, %41 : vector<16x128xf32>
      %43 = arith.truncf %42 : vector<16x128xf32> to vector<16x128xbf16>
      %c0_23 = arith.constant 0 : index
      %c0_24 = arith.constant 0 : index
      %44 = vector.load %arg9[%c0_23, %c0_24] : memref<16x128xbf16, #tpu.memory_space<vmem>>, vector<16x128xbf16>
      tpu.vector_store %arg9[%c0_23, %c0_24], %43 {strides = array<i32>} : memref<16x128xbf16, #tpu.memory_space<vmem>>, vector<16x128xbf16>,
    } else {
    }
    %c0_i32_2 = arith.constant 0 : i32
    %5 = arith.cmpi eq, %arg2, %c0_i32_2 : i32
    %6 = arith.extui %5 : i1 to i32
    %c0_i32_3 = arith.constant 0 : i32
    %7 = arith.cmpi ne, %6, %c0_i32_3 : i32
    scf.if %7 {
      %cst_12 = arith.constant 0.000000e+00 : f32
      %20 = vector.broadcast %cst_12 : f32 to vector<16x128xf32>
      %c0_13 = arith.constant 0 : index
      %c0_14 = arith.constant 0 : index
      %21 = vector.load %arg10[%c0_13, %c0_14] : memref<16x128xf32, #tpu.memory_space<vmem>>, vector<16x128xf32>
      tpu.vector_store %arg10[%c0_13, %c0_14], %20 {strides = array<i32>} : memref<16x128xf32, #tpu.memory_space<vmem>>, vector<16x128xf32>,
    } else {
    }
    %c128_i32 = arith.constant 128 : i32
    %8 = arith.muli %arg2, %c128_i32 : i32
    %9 = tpu.assume_multiple %8, 128 : i32
    %c0 = arith.constant 0 : index
    %c0_4 = arith.constant 0 : index
    %10 = vector.load %arg10[%c0, %c0_4] : memref<16x128xf32, #tpu.memory_space<vmem>>, vector<16x128xf32>
    %c0_5 = arith.constant 0 : index
    %11 = arith.index_cast %9 : i32 to index
    %12 = vector.load %arg9[%c0_5, %11] : memref<16x128xbf16, #tpu.memory_space<vmem>>, vector<16x128xbf16>
    %c0_6 = arith.constant 0 : index
    %c0_7 = arith.constant 0 : index
    %13 = vector.load %arg5[%c0_6, %c0_7] : memref<128x128xbf16, #tpu.memory_space<vmem>>, vector<128x128xbf16>
    %cst = arith.constant dense<0.000000e+00> : vector<16x128xf32>
    %14 = tpu.matmul %12, %13, %cst {dimension_numbers = #tpu.dot_dimension_numbers<[1], [0], [0], [1], [0, 0, 1, 1], [], []>} : vector<16x128xbf16>, vector<128x128xbf16>, vector<16x128xf32> -> vector<16x128xf32>
    %15 = arith.addf %10, %14 : vector<16x128xf32>
    %c0_8 = arith.constant 0 : index
    %c0_9 = arith.constant 0 : index
    %16 = vector.load %arg10[%c0_8, %c0_9] : memref<16x128xf32, #tpu.memory_space<vmem>>, vector<16x128xf32>
    tpu.vector_store %arg10[%c0_8, %c0_9], %15 {strides = array<i32>} : memref<16x128xf32, #tpu.memory_space<vmem>>, vector<16x128xf32>,
    %c0_i32_10 = arith.constant 0 : i32
    %17 = arith.cmpi eq, %arg2, %c0_i32_10 : i32
    %18 = arith.extui %17 : i1 to i32
    %c0_i32_11 = arith.constant 0 : i32
    %19 = arith.cmpi ne, %18, %c0_i32_11 : i32
    scf.if %19 {
      %c128_i32_12 = arith.constant 128 : i32
      %20 = arith.muli %arg1, %c128_i32_12 : i32
      %21 = tpu.assume_multiple %20, 128 : i32
      %c0_13 = arith.constant 0 : index
      %22 = arith.index_cast %21 : i32 to index
      %23 = vector.load %arg4[%c0_13, %22] : memref<16x128xf32, #tpu.memory_space<vmem>>, vector<16x128xf32>
      %c0_14 = arith.constant 0 : index
      %24 = memref.load %arg3[%c0_14] : memref<1xf32, #tpu.memory_space<smem>>
      %c0_15 = arith.constant 0 : index
      %c0_16 = arith.constant 0 : index
      %25 = vector.load %arg10[%c0_15, %c0_16] : memref<16x128xf32, #tpu.memory_space<vmem>>, vector<16x128xf32>
      %26 = vector.broadcast %24 : f32 to vector<16x128xf32>
      %27 = arith.mulf %26, %25 : vector<16x128xf32>
      %28 = arith.addf %23, %27 : vector<16x128xf32>
      %c0_17 = arith.constant 0 : index
      %c0_18 = arith.constant 0 : index
      %29 = vector.load %arg8[%c0_17, %c0_18] : memref<16x128xf32, #tpu.memory_space<vmem>>, vector<16x128xf32>
      tpu.vector_store %arg8[%c0_17, %c0_18], %28 {strides = array<i32>} : memref<16x128xf32, #tpu.memory_space<vmem>>, vector<16x128xf32>,
    } else {
    }
    return
  }
  func.func @transform_0(%arg0: i32, %arg1: i32, %arg2: i32, %arg3: memref<1xf32, #tpu.memory_space<smem>>) -> (i32, i32) {
    %c0_i32 = arith.constant 0 : i32
    %c0_i32_0 = arith.constant 0 : i32
    return %arg0, %c0_i32 : i32, i32
  }
  func.func @transform_1(%arg0: i32, %arg1: i32, %arg2: i32, %arg3: memref<1xf32, #tpu.memory_space<smem>>) -> (i32, i32) {
    %c0_i32 = arith.constant 0 : i32
    return %arg2, %arg1 : i32, i32
  }
  func.func @transform_2(%arg0: i32, %arg1: i32, %arg2: i32, %arg3: memref<1xf32, #tpu.memory_space<smem>>) -> (i32, i32) {
    %c0_i32 = arith.constant 0 : i32
    %c0_i32_0 = arith.constant 0 : i32
    %c0_i32_1 = arith.constant 0 : i32
    return %c0_i32, %c0_i32_0 : i32, i32
  }
  func.func @transform_3(%arg0: i32, %arg1: i32, %arg2: i32, %arg3: memref<1xf32, #tpu.memory_space<smem>>) -> (i32, i32) {
    %c0_i32 = arith.constant 0 : i32
    %c0_i32_0 = arith.constant 0 : i32
    %c0_i32_1 = arith.constant 0 : i32
    return %c0_i32, %c0_i32_0 : i32, i32
  }
  func.func @transform_4(%arg0: i32, %arg1: i32, %arg2: i32, %arg3: memref<1xf32, #tpu.memory_space<smem>>) -> (i32, i32) {
    %c0_i32 = arith.constant 0 : i32
    return %arg0, %arg1 : i32, i32
  }
}

</mosaic_0001>

<bundles_post_ra>
// kernel: tpu_custom_call.1
= control target key start
LH: loop header
LB: loop body
LE: loop exit
PB: predicated region body
PF: predicated region fallthrough
CT: control target
= control target key end

     0   :  { %11 = vsyncpa [#allocation7], 0  ;;  %s513_s0 = inlined_call_operand.<no memory space> [shape: f32[1], index: 0, kind: input, shape index: {}]   ;;  %s514_s1 = inlined_call_operand.hbm [shape: f32[16,128], index: 1, kind: input, shape index: {}]   ;;  %s515_s2 = inlined_call_operand.hbm [shape: bf16[128,128], index: 2, kind: input, shape index: {}]   ;;  %s516_s3 = inlined_call_operand.vmem [shape: f32[1,128], index: 3, kind: input, shape index: {}]   ;;  %s517_s4 = inlined_call_operand.vmem [shape: f32[1,128], index: 4, kind: input, shape index: {}]   ;;  %s518_s5 = inlined_call_operand.hbm [shape: f32[16,128], index: 5, kind: output, shape index: {}]  }
   0x1   :  { %12 = vsyncpa [#allocation10], 0 }
   0x2   :  { %13 = vsyncpa [#allocation8], 0  ;;  %s413_s18 = smov [#allocation6]   ;;  %s341_s22 = scalar_lea.hbm %s514_s1, 256 }
   0x3   :  { %s19_s19 = sshll.u32 %s413_s18, 4  ;;  %p342_p0 = scmp.ne.s32.totalorder %s514_s1, %s341_s22  ;;  %s20_s19 = int_to_ptr.vmem [resolvable:$true] %s19_s19 }
   0x4   :  { %p345_p1 = scmp.lt.u32.totalorder %s341_s22, %s514_s1 }
   0x6   :  { %p347_p2 = pnand %p345_p1, %p342_p0 }
   0x8   :  { %350 = shalt.err (!%p347_p2)
}
   0x9   :  { %s351_s27 = scalar_lea.vmem %s20_s19, 256  ;;  %p356_p4 = scmp.lt.s32.totalorder %s20_s19, %s20_s19 }
   0xa   :  { %p352_p3 = scmp.ne.s32.totalorder %s20_s19, %s351_s27  ;;  %p357_p5 = scmp.lt.s32.totalorder %s351_s27, %s351_s27 }
   0xc   :  { %p358_p6 = por %p357_p5, %p356_p4 }
   0xe   :  { %p359_p7 = pnand %p358_p6, %p352_p3 }
  0x10   :  { %362 = shalt.err (!%p359_p7)
}
  0x11   :  { %s414_s28 = smov 128   ;;  %s415_s29 = smov 8  }
  0x12   :  { %25 = dma.hbm_to_vmem [thread:$0]  %s514_s1, 256, %s20_s19, [#allocation7], %s414_s28, %s414_s28, %s415_s29  }
  0x13   :  { %s416_s7 = smov [#allocation9]   ;;  %s363_s11 = scalar_lea.hbm %s515_s2, 1024 }
  0x14   :  { %s31_s8 = sshll.u32 %s416_s7, 4  ;;  %p364_p8 = scmp.ne.s32.totalorder %s515_s2, %s363_s11  ;;  %s32_s8 = int_to_ptr.vmem [resolvable:$true] %s31_s8 }
  0x15   :  { %p367_p9 = scmp.lt.u32.totalorder %s363_s11, %s515_s2 }
  0x17   :  { %p369_p10 = pnand %p367_p9, %p364_p8 }
  0x19   :  { %372 = shalt.err (!%p369_p10)
}
  0x1a   :  { %s373_s16 = scalar_lea.vmem %s32_s8, 1024  ;;  %p378_p12 = scmp.lt.s32.totalorder %s32_s8, %s32_s8 }
  0x1b   :  { %p374_p11 = scmp.ne.s32.totalorder %s32_s8, %s373_s16  ;;  %p379_p13 = scmp.lt.s32.totalorder %s373_s16, %s373_s16 }
  0x1d   :  { %p380_p0 = por %p379_p13, %p378_p12 }
  0x1f   :  { %p381_p1 = pnand %p380_p0, %p374_p11 }
  0x21   :  { %384 = shalt.err (!%p381_p1)
}
  0x22   :  { %s417_s1 = smov 64   ;;  %s418_s17 = smov 4  }
  0x23   :  { %37 = dma.hbm_to_vmem [thread:$0]  %s515_s2, 1024, %s32_s8, [#allocation10], %s417_s1, %s417_s1, %s418_s17  }
  0x24   :  { %407 = dma.done.wait [#allocation7], 256  }
  0x25   :  { %408 = vsyncadd [#allocation7], 4294967040 }
  0x26   :  { %409 = dma.done.wait [#allocation10], 1024  }
  0x27   :  { %410 = vsyncadd [#allocation10], 4294966272  ;;  %v479_v0 = vld [vmem:[#allocation6] sm:$0xff]  ;;  %v481_v1 = vld [vmem:[#allocation6 + $0x8] sm:$0xff]  ;;  %v419_v11 = vmov 0.0   ;;  %vm420_vm0 = vmmov 0   ;;  %v249_v46 = vstv %s513_s0 }
  0x28   :  { %59 = vadd.xlane.f32.xlu0 %v479_v0  ;;  %v325_v10 = vld [vmem:[#allocation9] sm:$0xff]   ;;  %296 = vmatprep.subr.bf16.mxu0 %v419_v11  ;;  %v326_v12 = vld [vmem:[#allocation9 + $0x8] sm:$0xff]   ;;  %v327_v13 = vld [vmem:[#allocation9 + $0x10] sm:$0xff]  }
  0x29   :  { %297 = vmatpush3.bf16.msra.mxu0 %v325_v10  ;;  %v328_v14 = vld [vmem:[#allocation9 + $0x18] sm:$0xff]   ;;  %v329_v15 = vld [vmem:[#allocation9 + $0x20] sm:$0xff]   ;;  %312 = vmatprep.mubr.msk.bf16.mxu0 %vm420_vm0, %v419_v11  ;;  %v330_v16 = vld [vmem:[#allocation9 + $0x28] sm:$0xff]  }
  0x2a   :  { %298 = vmatprep.subr.bf16.mxu0 %v419_v11  ;;  %v331_v17 = vld [vmem:[#allocation9 + $0x30] sm:$0xff]   ;;  %v332_v18 = vld [vmem:[#allocation9 + $0x38] sm:$0xff]  }
  0x2b   :  { %v277_v37 = vld [vmem:[%s516_s3] ss:$0 sm:$0xff]  ;;  %s421_s3 = smov [#allocation11]  }
  0x2c   :  { %61 = vadd.xlane.f32.xlu0 %v481_v1  ;;  %v278_v41 = vld [vmem:[%s517_s4] ss:$0 sm:$0xff]  ;;  %s261_s25 = sshll.u32 %s421_s3, 4  ;;  %s262_s25 = int_to_ptr.vmem [resolvable:$true] %s261_s25 }
  0x2d   :  { %299 = vmatpush3.bf16.msra.mxu0 %v326_v12  ;;  %s385_s4 = scalar_lea.vmem %s262_s25, 256  ;;  %p390_p3 = scmp.lt.s32.totalorder %s262_s25, %s262_s25 }
  0x2e   :  { %300 = vmatprep.subr.bf16.mxu0 %v419_v11  ;;  %p386_p2 = scmp.ne.s32.totalorder %s262_s25, %s385_s4  ;;  %p391_p4 = scmp.lt.s32.totalorder %s385_s4, %s385_s4 }
  0x30   :  { %p392_p5 = por %p391_p4, %p390_p3 }
  0x31   :  { %301 = vmatpush3.bf16.msra.mxu0 %v327_v13 }
  0x32   :  { %302 = vmatprep.subr.bf16.mxu0 %v419_v11  ;;  %p393_p6 = pnand %p392_p5, %p386_p2 }
  0x35   :  { %303 = vmatpush3.bf16.msra.mxu0 %v328_v14 }
  0x36   :  { %304 = vmatprep.subr.bf16.mxu0 %v419_v11 }
  0x39   :  { %305 = vmatpush3.bf16.msra.mxu0 %v329_v15 }
  0x3a   :  { %306 = vmatprep.subr.bf16.mxu0 %v419_v11 }
  0x3d   :  { %307 = vmatpush3.bf16.msra.mxu0 %v330_v16 }
  0x3e   :  { %308 = vmatprep.subr.bf16.mxu0 %v419_v11 }
  0x41   :  { %309 = vmatpush3.bf16.msra.mxu0 %v331_v17 }
  0x42   :  { %310 = vmatprep.subr.bf16.mxu0 %v419_v11 }
  0x45   :  { %311 = vmatpush3.bf16.msra.mxu0 %v332_v18 }
  0xb5   :  { %v60_v2 = vpop.xlane.xlu0 %59 }
  0xb6   :  { %v64_v3 = vmul.f32 0.0078125, %v60_v2 }
  0xb8   :  { %v66_v4 = vsub.f32 %v479_v0, %v64_v3 }
  0xb9   :  { %v62_v5 = vpop.xlane.xlu0 %61 }
  0xba   :  { %v65_v6 = vmul.f32 0.0078125, %v62_v5  ;;  %v68_v7 = vmul.f32 %v66_v4, %v66_v4 }
  0xbc   :  { %v67_v8 = vsub.f32 %v481_v1, %v65_v6  ;;  %70 = vadd.xlane.f32.xlu1 %v68_v7 }
  0xbe   :  { %v69_v9 = vmul.f32 %v67_v8, %v67_v8 }
  0xc0   :  { %72 = vadd.xlane.f32.xlu1 %v69_v9 }
 0x149   :  { %v71_v19 = vpop.xlane.xlu1 %70 }
 0x14a   :  { %v75_v20 = vmul.f32 0.007874016, %v71_v19 }
 0x14c   :  { %333 = vrsqrt.f32 %v75_v20  ;;  %vm79_vm1 = vcmp.eq.f32.partialorder %v75_v20, inf  ;;  %v82_v25 = vand.u32 2147483648, %v75_v20  ;;  %vm81_vm2 = vcmp.eq.f32.partialorder %v75_v20, 0.0 }
 0x14d   :  { %v73_v21 = vpop.xlane.xlu1 %72 }
 0x14e   :  { %v76_v22 = vmul.f32 0.007874016, %v73_v21 }
 0x150   :  { %335 = vrsqrt.f32 %v76_v22  ;;  %vm86_vm3 = vcmp.eq.f32.partialorder %v76_v22, inf  ;;  %v89_v31 = vand.u32 2147483648, %v76_v22  ;;  %vm88_vm4 = vcmp.eq.f32.partialorder %v76_v22, 0.0 }
 0x156   :  { %v334_v23 = vpop.eup %333 }
 0x157   :  { %v78_v24 = vmul.f32 %v334_v23, %v75_v20 }
 0x159   :  { %v80_v26 = vsel %vm79_vm1, %v75_v20, %v78_v24 }
 0x15a   :  { %v336_v27 = vpop.eup %335  ;;  %v83_v28 = vsel %vm81_vm2, %v82_v25, %v80_v26 }
 0x15b   :  { %v91_v29 = vadd.f32 1e-06, %v83_v28  ;;  %v85_v30 = vmul.f32 %v336_v27, %v76_v22 }
 0x15d   :  { %v87_v32 = vsel %vm86_vm3, %v76_v22, %v85_v30  ;;  %337 = vrcp.f32 %v91_v29 }
 0x15e   :  { %v90_v33 = vsel %vm88_vm4, %v89_v31, %v87_v32 }
 0x15f   :  { %v92_v34 = vadd.f32 1e-06, %v90_v33 }
 0x161   :  { %339 = vrcp.f32 %v92_v34 }
 0x167   :  { %v338_v35 = vpop.eup %337 }
 0x168   :  { %v94_v36 = vmul.f32 %v338_v35, %v66_v4 }
 0x16a   :  { %v103_v40 = vmul.f32 %v277_v37, %v94_v36 }
 0x16b   :  { %v340_v38 = vpop.eup %339 }
 0x16c   :  { %v96_v39 = vmul.f32 %v340_v38, %v67_v8  ;;  %v111_v43 = vadd.f32 %v278_v41, %v103_v40 }
 0x16e   :  { %v104_v42 = vmul.f32 %v277_v37, %v96_v39 }
 0x170   :  { %v112_v44 = vadd.f32 %v278_v41, %v104_v42 }
 0x172   :  { %v113_v45 = vpack.c.bf16 %v112_v44, %v111_v43 }
 0x174   :  { %313 = vmatmul.mubr.bf16.vlgmr.msra.gmra.mrb[0].mxu0 %v113_v45 }
 0x247   :  { %v226_v47 = vpop.f32.mrb[0].mxu0 }
 0x248   :  { %v250_v48 = vmul.f32 %v249_v46, %v226_v47  ;;  %v314_v49 = vpop.f32.mrb[1].mxu0 }
 0x249   :  { %v229_v50 = vpop.f32.mrb[2].mxu0 }
 0x24a   :  { %v252_v51 = vadd.f32 %v250_v48, %v479_v0  ;;  %v251_v52 = vmul.f32 %v249_v46, %v229_v50  ;;  %v315_v53 = vpop.f32.mrb[3].mxu0 }
 0x24c   :  { %254 = vst [vmem:[#allocation11] sm:$0xff] %v252_v51  ;;  %v253_v54 = vadd.f32 %v251_v52, %v481_v1 }
 0x24e   :  { %255 = vst [vmem:[#allocation11 + $0x8] sm:$0xff] %v253_v54 }
 0x24f   :  { %396 = shalt.err (!%p393_p6)
}
 0x250   :  { %s397_s27 = scalar_lea.hbm %s518_s5, 256 }
 0x251   :  { %p398_p7 = scmp.ne.s32.totalorder %s518_s5, %s397_s27  ;;  %p401_p8 = scmp.lt.u32.totalorder %s397_s27, %s518_s5 }
 0x253   :  { %p403_p9 = pnand %p401_p8, %p398_p7 }
 0x255   :  { %406 = shalt.err (!%p403_p9)
}
 0x256   :  { %267 = dma.vmem_to_hbm [thread:$0]  %s262_s25, 256, %s518_s5, [#allocation8], %s414_s28, %s414_s28, %s415_s29  }
 0x257   :  { %411 = dma.done.wait [#allocation8], 256  }
 0x258   :  { %412 = vsyncadd [#allocation8], 4294967040 }
 0x259   :  { %271 = vsyncpa [#allocation7], 1 }
 0x25a   :  { %272 = vsyncpa [#allocation10], 1 }
 0x25b   :  { %273 = vsyncpa [#allocation8], 1 }

</bundles_post_ra>
